<compile_context>
chip_gen: v6e
topology: v6e:2x2x1
jax: 0.10.0
libtpu: 0.0.40
codegen_flags: <defaults>
</compile_context>

<pallas_src>
import functools

import jax
import jax.numpy as jnp
import numpy as np
from jax.experimental import pallas as pl
from jax.experimental.pallas import tpu as pltpu


def _round_up(x, m):
    return ((x + m - 1) // m) * m


def _vmem_capacity_bytes():
    """Per-TensorCore VMEM capacity; conservative 64 MiB fallback (v7x-safe)."""
    try:
        info = pltpu.get_tpu_info()
        for attr in ("vmem_capacity_bytes", "vmem_size_bytes", "vmem_bytes"):
            v = getattr(info, attr, None)
            if v:
                return int(v)
    except Exception:
        pass
    return 64 << 20


def _linearT(a, b):
    # nn.Linear semantics (no bias): y = a @ b.T ; a:(M,K), b:(N,K) -> (M,N), f32 acc.
    return jax.lax.dot_general(
        a, b, (((1,), (1,)), ((), ())), preferred_element_type=jnp.float32
    )


def _dot(a, b):
    # Plain a @ b with f32 accumulation.
    return jax.lax.dot_general(
        a, b, (((1,), (0,)), ((), ())), preferred_element_type=jnp.float32
    )


# ----------------------------------------------------------------------------- #
# Kernel A: native 3-D path (used when H % 128 == 0, i.e. real model sizes).
# ----------------------------------------------------------------------------- #
def _eb_kernel_3d(x_ref, w1_ref, w2_ref, v1_ref, v2_ref, out_ref, e_ref,
                  *, skip, comp_dtype):
    tb, c, h = x_ref.shape
    h2 = w1_ref.shape[0]

    x = x_ref[...]                                       # (TB, C, H), native dtype
    # NOTE: these reshapes are layout-free only when C % 8 == 0 (sublane aligned);
    # for other C they are still correct but pay a VMEM relayout (perf only).
    x2d = x.reshape(tb * c, h)
    if np.dtype(comp_dtype) != np.dtype(x.dtype):
        x2d = x2d.astype(comp_dtype)                     # bf16 comp operands (v6e/v7x)

    # comp[0:2]: Linear(H -> H//2, no bias) + ReLU   (one big MXU matmul, f32 acc)
    h1 = jnp.maximum(_linearT(x2d, w1_ref[...]), 0.0)            # (TB*C, H2) f32

    # comp[2]: Linear(H//2 -> 1) is rank-1 -> VPU multiply + XLU lane reduction
    w2 = w2_ref[...].reshape(1, 1, h2)                           # (1, 1, H2) f32
    s = jnp.sum(h1.reshape(tb, c, h2) * w2, axis=-1)             # (TB, C) == S^T rows

    # activate: Linear(C->C//2)+ReLU, Linear(C//2->C), Sigmoid (batched, tiny)
    a1 = jnp.maximum(_linearT(s, v1_ref[...]), 0.0)              # (TB, C2) f32
    e = jax.nn.sigmoid(_linearT(a1, v2_ref[...]))                # (TB, C)  f32

    e_ref[...] = e.astype(e_ref.dtype)

    # Gate the input; skip folded into the gate: out = inp * (E + 1).
    scale = e + 1.0 if skip else e
    out_ref[...] = (x * scale.astype(x.dtype)[:, :, None]).astype(out_ref.dtype)


# ----------------------------------------------------------------------------- #
# Kernel B: lane-dense flattened path (used when H % 128 != 0 but C*H % 128 == 0).
# The comp projection uses small block-diagonal weights so the kernel never
# reshapes the big tensor and every load/store is an unmasked 128-lane access.
# ----------------------------------------------------------------------------- #
def _eb_kernel_flat(x_ref, w1bd_ref, w2bd_ref, v1_ref, v2_ref, exp_ref,
                    out_ref, e_ref, *, skip):
    x = x_ref[...]                                       # (TB, C*H), lane-dense slab

    # comp as block-diagonal matmuls: no in-kernel reshape / relayout at all.
    h1 = jnp.maximum(_dot(x, w1bd_ref[...]), 0.0)        # (TB, C*H2) f32
    s = _dot(h1, w2bd_ref[...])                          # (TB, C)    f32 (== S^T rows)

    a1 = jnp.maximum(_linearT(s, v1_ref[...]), 0.0)      # (TB, C2) f32
    e = jax.nn.sigmoid(_linearT(a1, v2_ref[...]))        # (TB, C)  f32

    e_ref[...] = e.astype(e_ref.dtype)

    scale = e + 1.0 if skip else e
    # Expand (TB, C) -> (TB, C*H) with a 0/1 selection matmul (exact, no reshape).
    scale_row = jax.lax.dot_general(
        scale.astype(x.dtype), exp_ref[...], (((1,), (0,)), ((), ())))
    out_ref[...] = (x * scale_row).astype(out_ref.dtype)


# ----------------------------------------------------------------------------- #
# Wrapper
# ----------------------------------------------------------------------------- #
def enhanced_block(inp, w1, w2, v1, v2, *, skip=True, tb=None, comp_dtype=None):
    """EnhancedBlock forward. inp: (B, channel, hid_size). Returns (out, E=(B,1,C))."""
    B, C, H = inp.shape
    H2 = w1.shape[0]
    C2 = v1.shape[0]
    x_dtype = inp.dtype
    itemsize = np.dtype(x_dtype).itemsize

    vmem_cap = _vmem_capacity_bytes()          # 128 MiB on v5e/v6e, 64 MiB/TC on v7x
    vmem_budget = (vmem_cap * 3) // 4          # headroom for Mosaic internals

    # bf16 comp operands (f32 accumulation) keep the matmul hidden under DMA on
    # v6e/v7x (f32 matmul is multi-pass emulated) at negligible accuracy cost.
    if comp_dtype is None:
        comp_dtype = (jnp.bfloat16
                      if (np.dtype(x_dtype) == np.dtype(np.float32) and H >= 256)
                      else x_dtype)

    # Lane-dense layout choice (out is the dominant HBM traffic).
    use_flat = (
        H % 128 != 0                              # 3-D path already dense otherwise
        and (C * H) % 128 == 0                    # flattened last dim must be dense
        and C * H * C * H2 * itemsize <= (2 << 20)  # block-diag weights stay tiny
    )

    if use_flat:
        eye = jnp.eye(C, dtype=jnp.float32)
        w1bd = jnp.kron(eye, w1.astype(jnp.float32).T).astype(x_dtype)       # (C*H, C*H2)
        w2bd = jnp.kron(eye, w2.astype(jnp.float32).T)                        # (C*H2, C) f32
        expander = jnp.kron(eye, jnp.ones((1, H), jnp.float32)).astype(x_dtype)  # (C, C*H)
        weight_args = (w1bd, w2bd, v1.astype(jnp.float32), v2.astype(jnp.float32),
                       expander)
        bytes_per_batch = _round_up(C * H, 128) * itemsize
    else:
        weight_args = (w1.astype(comp_dtype), w2.astype(jnp.float32),
                       v1.astype(jnp.float32), v2.astype(jnp.float32))
        # VMEM footprint of one batch element is lane/sublane padded.
        bytes_per_batch = _round_up(C, 8) * _round_up(H, 128) * itemsize

    w_bytes = sum(int(np.prod(w.shape)) * np.dtype(w.dtype).itemsize
                  for w in weight_args)

    # ---- batch-block size TB (generation aware) -------------------------------
    if tb is None:
        # Target ~1/12 of VMEM for the input tile: with double-buffered in/out
        # tiles + f32 intermediates this lands well inside `vmem_budget`
        # (~10 MiB tiles on v5e/v6e, ~5 MiB on v7x).
        tb = max(1, max(vmem_cap // 12, 1 << 20) // bytes_per_batch)
    tb = min(int(tb), B)
    if B >= 2:
        tb = min(tb, pl.cdiv(B, 2))      # >= 2 grid steps: keep both v7x TCs busy
    if tb < B:
        tb = max(8, (tb // 8) * 8)       # sublane alignment of the (tb, ...) blocks
        tb = min(tb, B)

    # Prefer an even number of grid steps (balanced across 2 TensorCores).
    steps = pl.cdiv(B, tb)
    if tb < B and steps % 2 == 1 and steps <= 8:
        for cand in range(tb - 8, 7, -8):
            if pl.cdiv(B, cand) % 2 == 0:
                tb = cand
                break

    # ---- VMEM accounting (double-buffered in/out/E + weights + f32 h1) --------
    def _vmem_need(tb_):
        in_tile = tb_ * bytes_per_batch
        e_tile = tb_ * _round_up(C, 128) * itemsize
        if use_flat:
            interm = tb_ * _round_up(C * H2, 128) * 4
        else:
            interm = tb_ * _round_up(C, 8) * _round_up(H2, 128) * 4
        return 2 * in_tile + 2 * (in_tile + e_tile) + 2 * w_bytes + 2 * interm

    while _vmem_need(tb) > vmem_budget and tb > 8:
        tb = (tb - 1) // 8 * 8 if tb % 8 else tb - 8
        tb = max(tb, 8)

    vmem_limit = int(min(max(_vmem_need(tb) + (2 << 20), 16 << 20), vmem_cap))

    grid = (pl.cdiv(B, tb),)
    compiler_params = pltpu.CompilerParams(
        dimension_semantics=("parallel",),       # megacore-shardable batch axis
        vmem_limit_bytes=vmem_limit,
    )

    if use_flat:
        x2 = inp.reshape(B, C * H)               # row-major reshape: free in HBM
        out2, e2d = pl.pallas_call(
            functools.partial(_eb_kernel_flat, skip=skip),
            out_shape=(jax.ShapeDtypeStruct((B, C * H), x_dtype),
                       jax.ShapeDtypeStruct((B, C), x_dtype)),
            grid_spec=pltpu.PrefetchScalarGridSpec(
                num_scalar_prefetch=0,
                grid=grid,
                in_specs=[
                    pl.BlockSpec((tb, C * H), lambda b: (b, 0)),        # inp slab
                    pl.BlockSpec((C * H, C * H2), lambda b: (0, 0)),    # block-diag W1
                    pl.BlockSpec((C * H2, C), lambda b: (0, 0)),        # block-diag w2
                    pl.BlockSpec((C2, C), lambda b: (0, 0)),            # activate V1
                    pl.BlockSpec((C, C2), lambda b: (0, 0)),            # activate V2
                    pl.BlockSpec((C, C * H), lambda b: (0, 0)),         # gate expander
                ],
                out_specs=[
                    pl.BlockSpec((tb, C * H), lambda b: (b, 0)),
                    pl.BlockSpec((tb, C), lambda b: (b, 0)),
                ],
            ),
            compiler_params=compiler_params,
        )(x2, *weight_args)
        out = out2.reshape(B, C, H)
    else:
        out, e2d = pl.pallas_call(
            functools.partial(_eb_kernel_3d, skip=skip, comp_dtype=comp_dtype),
            out_shape=(jax.ShapeDtypeStruct((B, C, H), x_dtype),
                       jax.ShapeDtypeStruct((B, C), x_dtype)),
            grid_spec=pltpu.PrefetchScalarGridSpec(
                num_scalar_prefetch=0,
                grid=grid,
                in_specs=[
                    pl.BlockSpec((tb, C, H), lambda b: (b, 0, 0)),      # inp batch block
                    pl.BlockSpec((H2, H), lambda b: (0, 0)),            # comp W1 (resident)
                    pl.BlockSpec((1, H2), lambda b: (0, 0)),            # comp W2 (resident)
                    pl.BlockSpec((C2, C), lambda b: (0, 0)),            # activate V1
                    pl.BlockSpec((C, C2), lambda b: (0, 0)),            # activate V2
                ],
                out_specs=[
                    pl.BlockSpec((tb, C, H), lambda b: (b, 0, 0)),
                    pl.BlockSpec((tb, C), lambda b: (b, 0)),
                ],
            ),
            compiler_params=compiler_params,
        )(inp, *weight_args)

    # Module contract: E has shape (B, 1, channel).
    return out, e2d.reshape(B, 1, C)


def reference(inp, w1, w2, v1, v2, *, skip=True):
    s = jnp.maximum(inp @ w1.T, 0.0) @ w2.T                   # (B, C, 1)
    st = jnp.swapaxes(s, 1, 2)                                # (B, 1, C)
    e = jax.nn.sigmoid(jnp.maximum(st @ v1.T, 0.0) @ v2.T)    # (B, 1, C)
    out = inp * jnp.swapaxes(e, 1, 2)
    if skip:
        out = out + inp
    return out, e


if __name__ == "__main__":
    def _make(B, C, H, key):
        H2, C2 = H // 2, C // 2
        k_in, k_w1, k_w2, k_v1, k_v2 = jax.random.split(key, 5)
        inp = jax.random.normal(k_in, (B, C, H), dtype=jnp.float32)
        # Deterministic Linear weights (PyTorch-like uniform scale, no bias).
        w1 = jax.random.uniform(k_w1, (H2, H), jnp.float32, -1.0, 1.0) / np.sqrt(H)
        w2 = jax.random.uniform(k_w2, (1, H2), jnp.float32, -1.0, 1.0) / np.sqrt(H2)
        v1 = jax.random.uniform(k_v1, (C2, C), jnp.float32, -1.0, 1.0) / np.sqrt(C)
        v2 = jax.random.uniform(k_v2, (C, C2), jnp.float32, -1.0, 1.0) / np.sqrt(C2)
        return inp, w1, w2, v1, v2

    key = jax.random.PRNGKey(0)
    k1, k2 = jax.random.split(key)

    # Case 1: hid_size=32 (H % 128 != 0) -> lane-dense flattened path, f32 comp.
    B, C, H = 16, 8, 32
    args = _make(B, C, H, k1)
    out, e = enhanced_block(*args, skip=True)
    out = jax.block_until_ready(out)
    e = jax.block_until_ready(e)
    out_ref, e_ref = reference(*args, skip=True)
    np.testing.assert_allclose(np.asarray(out), np.asarray(out_ref), rtol=1e-3, atol=1e-3)
    np.testing.assert_allclose(np.asarray(e), np.asarray(e_ref), rtol=1e-3, atol=1e-3)
    assert out.shape == (B, C, H) and e.shape == (B, 1, C)

    # Case 2: hid_size=128 (H % 128 == 0) -> native 3-D path; force the bf16 comp
    # matmul branch (the v6e/v7x large-H configuration) to exercise it.
    B, C, H = 16, 8, 128
    args = _make(B, C, H, k2)
    out, e = enhanced_block(*args, skip=True, comp_dtype=jnp.bfloat16)
    out = jax.block_until_ready(out)
    e = jax.block_until_ready(e)
    out_ref, e_ref = reference(*args, skip=True)
    np.testing.assert_allclose(np.asarray(out), np.asarray(out_ref), rtol=2e-2, atol=2e-2)
    np.testing.assert_allclose(np.asarray(e), np.asarray(e_ref), rtol=2e-2, atol=2e-2)
    assert out.shape == (B, C, H) and e.shape == (B, 1, C)

    print("KERNEL_OK")
</pallas_src>

<mosaic_0001>
module attributes {stable_mosaic.version = 11 : i64} {
  func.func @_eb_kernel_flat(%arg0: i32, %arg1: memref<8x256xf32, #tpu.memory_space<vmem>>, %arg2: memref<256x128xf32, #tpu.memory_space<vmem>>, %arg3: memref<128x8xf32, #tpu.memory_space<vmem>>, %arg4: memref<4x8xf32, #tpu.memory_space<vmem>>, %arg5: memref<8x4xf32, #tpu.memory_space<vmem>>, %arg6: memref<8x256xf32, #tpu.memory_space<vmem>>, %arg7: memref<8x256xf32, #tpu.memory_space<vmem>>, %arg8: memref<8x8xf32, #tpu.memory_space<vmem>>) attributes {dimension_semantics = [#tpu.dimension_semantics<parallel>], iteration_bounds = array<i64: 2>, scalar_prefetch = 0 : i64, scratch_operands = 0 : i64, tpu.core_type = #tpu.core_type<tc>, window_params = [{transform_indices = @transform_0, window_bounds = array<i64: 8, 256>}, {pipeline_mode = #tpu.pipeline_mode<synchronous>, transform_indices = @transform_1, window_bounds = array<i64: 256, 128>}, {pipeline_mode = #tpu.pipeline_mode<synchronous>, transform_indices = @transform_2, window_bounds = array<i64: 128, 8>}, {pipeline_mode = #tpu.pipeline_mode<synchronous>, transform_indices = @transform_3, window_bounds = array<i64: 4, 8>}, {pipeline_mode = #tpu.pipeline_mode<synchronous>, transform_indices = @transform_4, window_bounds = array<i64: 8, 4>}, {pipeline_mode = #tpu.pipeline_mode<synchronous>, transform_indices = @transform_5, window_bounds = array<i64: 8, 256>}, {transform_indices = @transform_6, window_bounds = array<i64: 8, 256>}, {transform_indices = @transform_7, window_bounds = array<i64: 8, 8>}]} {
    %c0 = arith.constant 0 : index
    %c0_0 = arith.constant 0 : index
    %0 = vector.load %arg1[%c0, %c0_0] : memref<8x256xf32, #tpu.memory_space<vmem>>, vector<8x256xf32>
    %c0_1 = arith.constant 0 : index
    %c0_2 = arith.constant 0 : index
    %1 = vector.load %arg2[%c0_1, %c0_2] : memref<256x128xf32, #tpu.memory_space<vmem>>, vector<256x128xf32>
    %cst = arith.constant dense<0.000000e+00> : vector<8x128xf32>
    %2 = tpu.matmul %0, %1, %cst {dimension_numbers = #tpu.dot_dimension_numbers<[1], [0], [0], [1], [0, 0, 1, 1], [], []>} : vector<8x256xf32>, vector<256x128xf32>, vector<8x128xf32> -> vector<8x128xf32>
    %cst_3 = arith.constant 0.000000e+00 : f32
    %3 = vector.broadcast %cst_3 : f32 to vector<8x128xf32>
    %4 = arith.maximumf %2, %3 : vector<8x128xf32>
    %c0_4 = arith.constant 0 : index
    %c0_5 = arith.constant 0 : index
    %5 = vector.load %arg3[%c0_4, %c0_5] : memref<128x8xf32, #tpu.memory_space<vmem>>, vector<128x8xf32>
    %cst_6 = arith.constant dense<0.000000e+00> : vector<8x8xf32>
    %6 = tpu.matmul %4, %5, %cst_6 {dimension_numbers = #tpu.dot_dimension_numbers<[1], [0], [0], [1], [0, 0, 1, 1], [], []>} : vector<8x128xf32>, vector<128x8xf32>, vector<8x8xf32> -> vector<8x8xf32>
    %c0_7 = arith.constant 0 : index
    %c0_8 = arith.constant 0 : index
    %7 = vector.load %arg4[%c0_7, %c0_8] : memref<4x8xf32, #tpu.memory_space<vmem>>, vector<4x8xf32>
    %cst_9 = arith.constant dense<0.000000e+00> : vector<8x4xf32>
    %8 = tpu.matmul %6, %7, %cst_9 {dimension_numbers = #tpu.dot_dimension_numbers<[1], [1], [0], [0], [0, 0, 1, 0], [], []>} : vector<8x8xf32>, vector<4x8xf32>, vector<8x4xf32> -> vector<8x4xf32>
    %cst_10 = arith.constant 0.000000e+00 : f32
    %9 = vector.broadcast %cst_10 : f32 to vector<8x4xf32>
    %10 = arith.maximumf %8, %9 : vector<8x4xf32>
    %c0_11 = arith.constant 0 : index
    %c0_12 = arith.constant 0 : index
    %11 = vector.load %arg5[%c0_11, %c0_12] : memref<8x4xf32, #tpu.memory_space<vmem>>, vector<8x4xf32>
    %cst_13 = arith.constant dense<0.000000e+00> : vector<8x8xf32>
    %12 = tpu.matmul %10, %11, %cst_13 {dimension_numbers = #tpu.dot_dimension_numbers<[1], [1], [0], [0], [0, 0, 1, 0], [], []>} : vector<8x4xf32>, vector<8x4xf32>, vector<8x8xf32> -> vector<8x8xf32>
    %13 = arith.negf %12 : vector<8x8xf32>
    %14 = math.exp %13 : vector<8x8xf32>
    %cst_14 = arith.constant 1.000000e+00 : f32
    %15 = vector.broadcast %cst_14 : f32 to vector<8x8xf32>
    %16 = arith.addf %15, %14 : vector<8x8xf32>
    %17 = arith.divf %15, %16 : vector<8x8xf32>
    %c0_15 = arith.constant 0 : index
    %c0_16 = arith.constant 0 : index
    %18 = vector.load %arg8[%c0_15, %c0_16] : memref<8x8xf32, #tpu.memory_space<vmem>>, vector<8x8xf32>
    tpu.vector_store %arg8[%c0_15, %c0_16], %17 {strides = array<i32>} : memref<8x8xf32, #tpu.memory_space<vmem>>, vector<8x8xf32>,
    %cst_17 = arith.constant 1.000000e+00 : f32
    %19 = vector.broadcast %cst_17 : f32 to vector<8x8xf32>
    %20 = arith.addf %17, %19 : vector<8x8xf32>
    %c0_18 = arith.constant 0 : index
    %c0_19 = arith.constant 0 : index
    %21 = vector.load %arg6[%c0_18, %c0_19] : memref<8x256xf32, #tpu.memory_space<vmem>>, vector<8x256xf32>
    %cst_20 = arith.constant dense<0.000000e+00> : vector<8x256xf32>
    %22 = tpu.matmul %20, %21, %cst_20 {dimension_numbers = #tpu.dot_dimension_numbers<[1], [0], [0], [1], [0, 0, 1, 1], [], []>} : vector<8x8xf32>, vector<8x256xf32>, vector<8x256xf32> -> vector<8x256xf32>
    %23 = arith.mulf %0, %22 : vector<8x256xf32>
    %c0_21 = arith.constant 0 : index
    %c0_22 = arith.constant 0 : index
    %24 = vector.load %arg7[%c0_21, %c0_22] : memref<8x256xf32, #tpu.memory_space<vmem>>, vector<8x256xf32>
    tpu.vector_store %arg7[%c0_21, %c0_22], %23 {strides = array<i32>} : memref<8x256xf32, #tpu.memory_space<vmem>>, vector<8x256xf32>,
    return
  }
  func.func @transform_0(%arg0: i32) -> (i32, i32) {
    %c0_i32 = arith.constant 0 : i32
    %c0_i32_0 = arith.constant 0 : i32
    return %arg0, %c0_i32 : i32, i32
  }
  func.func @transform_1(%arg0: i32) -> (i32, i32) {
    %c0_i32 = arith.constant 0 : i32
    %c0_i32_0 = arith.constant 0 : i32
    %c0_i32_1 = arith.constant 0 : i32
    return %c0_i32, %c0_i32_0 : i32, i32
  }
  func.func @transform_2(%arg0: i32) -> (i32, i32) {
    %c0_i32 = arith.constant 0 : i32
    %c0_i32_0 = arith.constant 0 : i32
    %c0_i32_1 = arith.constant 0 : i32
    return %c0_i32, %c0_i32_0 : i32, i32
  }
  func.func @transform_3(%arg0: i32) -> (i32, i32) {
    %c0_i32 = arith.constant 0 : i32
    %c0_i32_0 = arith.constant 0 : i32
    %c0_i32_1 = arith.constant 0 : i32
    return %c0_i32, %c0_i32_0 : i32, i32
  }
  func.func @transform_4(%arg0: i32) -> (i32, i32) {
    %c0_i32 = arith.constant 0 : i32
    %c0_i32_0 = arith.constant 0 : i32
    %c0_i32_1 = arith.constant 0 : i32
    return %c0_i32, %c0_i32_0 : i32, i32
  }
  func.func @transform_5(%arg0: i32) -> (i32, i32) {
    %c0_i32 = arith.constant 0 : i32
    %c0_i32_0 = arith.constant 0 : i32
    %c0_i32_1 = arith.constant 0 : i32
    return %c0_i32, %c0_i32_0 : i32, i32
  }
  func.func @transform_6(%arg0: i32) -> (i32, i32) {
    %c0_i32 = arith.constant 0 : i32
    %c0_i32_0 = arith.constant 0 : i32
    return %arg0, %c0_i32 : i32, i32
  }
  func.func @transform_7(%arg0: i32) -> (i32, i32) {
    %c0_i32 = arith.constant 0 : i32
    %c0_i32_0 = arith.constant 0 : i32
    return %arg0, %c0_i32 : i32, i32
  }
}

</mosaic_0001>

<bundles_post_ra>
// kernel: tpu_custom_call.1
= control target key start
LH: loop header
LB: loop body
LE: loop exit
PB: predicated region body
PF: predicated region fallthrough
CT: control target
= control target key end

     0   :  { %13 = vsyncpa [#allocation3], 0  ;;  %s1386_s0 = inlined_call_operand.vmem [shape: f32[16,256], index: 0, kind: input, shape index: {}]   ;;  %s1387_s1 = inlined_call_operand.hbm [shape: f32[256,128], index: 1, kind: input, shape index: {}]   ;;  %s1388_s2 = inlined_call_operand.vmem [shape: f32[128,8], index: 2, kind: input, shape index: {}]   ;;  %s1389_s3 = inlined_call_operand.vmem [shape: f32[4,8], index: 3, kind: input, shape index: {}]   ;;  %s1390_s4 = inlined_call_operand.vmem [shape: f32[8,4], index: 4, kind: input, shape index: {}]   ;;  %s1391_s5 = inlined_call_operand.vmem [shape: f32[8,256], index: 5, kind: input, shape index: {}]   ;;  %s1392_s6 = inlined_call_operand.hbm [shape: f32[16,256], index: 6, kind: output, shape index: {0}]   ;;  %s1393_s7 = inlined_call_operand.vmem [shape: f32[16,8], index: 7, kind: output, shape index: {1}]  }
   0x1   :  { %14 = vsyncpa [#allocation4], 0 }
   0x2   :  { %16 = vsyncpa [#allocation4 + $0x1], 0  ;;  %s1176_s24 = smov 0   ;;  %s1178_s25 = smov 0  }
   0x3   :  { %s1180_s26 = smov 0   ;;  %s1182_s27 = smov 0  }
   0x4 LB: > { %s1197_s28 = sadd.s32 4294967295, %s1128_s27   ;;  %s856_s29 = sadd.s32 4294967294, %s1128_s27   ;;  %s1128_s27 = sphi %s1182_s27, %s1401_s27   ;;  %s1124_s26 = sphi %s1180_s26, %s1400_s26   ;;  %s1120_s25 = sphi %s1178_s25, %s1399_s25   ;;  %s1116_s24 = sphi %s1176_s24, %s1398_s24  }
   0x5   : > { %s1201_s30 = sadd.s32 1, %s1128_s27   ;;  %s160_s8 = sadd.s32 1, %s1124_s26 }
   0x6   : > { %s157_s9 = ssub.s32 %s1128_s27, %s1201_s30  ;;  %p170_p0 = scmp.ne.s32.totalorder %s1124_s26, %s1120_s25 }
   0x7   : > { %p158_p1 = scmp.eq.s32.totalorder %s157_s9, 0  ;;  %p171_p2 = scmp.eq.s32.totalorder %s1197_s28, 1 }
   0x8   : > { %p176_p3 = scmp.ne.s32.totalorder %s1120_s25, %s1116_s24  ;;  %p177_p4 = scmp.eq.s32.totalorder %s856_s29, 1 }
   0x9   : > { %s1212_s10 = scalar_select %p158_p1, %s1124_s26, %s160_s8  }
   0xa   : > { %p1214_p5 = por %p171_p2, %p170_p0  ;;  %p1218_p6 = por %p177_p4, %p176_p3 }
   0xb   : > { %p857_p7 = scmp.ge.s32.totalorder %s1128_s27, 1  ;;  %p210_p8 = scmp.lt.s32.totalorder %s1128_s27, 3 }
   0xc   : > { %s1395_s12 = scalar_select %p1218_p6, 1, 0 }
   0xd   : > { %p994_p9 = scmp.eq.s32.totalorder %s1197_s28, 0  ;;  %p1225_p10 = pnand %p857_p7, %p210_p8 }
   0xe   : > { %s1130_s14 = smov [#allocation2]  }
   0xf   : > { %s222_s15 = sshll.u32 %s1130_s14, 4  ;;  %p986_p11 = pneg %p1225_p10  ;;  %s223_s15 = int_to_ptr.vmem [resolvable:$true] %s222_s15 }
  0x10   : > { %s1049_s16 = scalar_lea.vmem %s223_s15, 4096  ;;  %p1057_p3 = scmp.lt.s32.totalorder %s223_s15, %s223_s15 }
  0x11   : > { %p987_p12 = pnand %p994_p9, %p986_p11  ;;  %p1050_p0 = scmp.ne.s32.totalorder %s223_s15, %s1049_s16 }
  0x12   : > { %p1058_p4 = scmp.lt.s32.totalorder %s1049_s16, %s1049_s16 }
  0x13   : > { %p1040_p13 = pneg %p987_p12 }
  0x14   : > { %p1059_p6 = por %p1058_p4, %p1057_p3 }
  0x15   : > { %p1052_p1 = pnand %p1050_p0, %p1040_p13 }
  0x17   : > { %p1053_p2 = pneg %p1052_p1 }
  0x19   : > { %p1060_p7 = pnand %p1059_p6, %p1053_p2 }
  0x1b   : > { %1063 = shalt.err (!%p1060_p7)
}
  0x1c   : > { %s1131_s17 = smov 128   ;;  %s1132_s18 = smov 8  }
  0x1d   : > { %989 = dma.hbm_to_vmem [thread:$0]  (!%p987_p12), %s1387_s1, 4096, %s223_s15, [#allocation3], %s1131_s17, %s1131_s17, %s1132_s18  }
  0x1e   : > { %258 = sbr.rel (%p1225_p10) target bundleno = 1093 (0x445), region = 44 }
  0x23   : > { %1107 = dma.done.wait (%p994_p9), [#allocation3], 4096  }
  0x24   : > { %1109 = vsyncadd (%p994_p9), [#allocation3], 4294963200  ;;  %v1133_v0 = vmov 0.0   ;;  %p294_p6 = scmp.lt.s32.totalorder %s1197_s28, 1  ;;  %v336_v1 = vld [vmem:[#allocation2 + $0xf8] sm:$0xff]  ;;  %v335_v3 = vld [vmem:[#allocation2 + $0xf0] sm:$0xff] }
  0x25   : > { %935 = vmatprep.subr.mxu1 %v1133_v0  ;;  %v320_v2 = vld [vmem:[#allocation2 + $0x78] sm:$0xff]  ;;  %879 = vmatprep.subr.mxu0 %v336_v1  ;;  %v319_v4 = vld [vmem:[#allocation2 + $0x70] sm:$0xff]  ;;  %v334_v5 = vld [vmem:[#allocation2 + $0xe8] sm:$0xff]  ;;  %vm1134_vm0 = vmmov 0   ;;  %vm495_vm1 = vcmask 64512   ;;  %vm574_vm2 = vcmask 31744  }
  0x26   : > { %s1245_s21 = scalar_select %p294_p6, %s1197_s28, 1  ;;  %880 = vmatpush3.msra.mxu0 %v320_v2  ;;  %v318_v6 = vld [vmem:[#allocation2 + $0x68] sm:$0xff]  ;;  %v333_v7 = vld [vmem:[#allocation2 + $0xe0] sm:$0xff]  ;;  %v332_v9 = vld [vmem:[#allocation2 + $0xd8] sm:$0xff]  ;;  %967 = vmatprep.mubr.msk.f32.mxu1 %vm1134_vm0, %v1133_v0 }
  0x27   : > { %881 = vmatprep.subr.mxu0 %v335_v3  ;;  %v317_v8 = vld [vmem:[#allocation2 + $0x60] sm:$0xff]  ;;  %v316_v10 = vld [vmem:[#allocation2 + $0x58] sm:$0xff]  ;;  %v331_v11 = vld [vmem:[#allocation2 + $0xd0] sm:$0xff]  ;;  %s285_s18 = sand.u32 1, %s1120_s25   ;;  %s878_s20 = sshll.u32 %s1197_s28, 8 }
  0x28   : > { %882 = vmatpush3.msra.mxu0 %v319_v4  ;;  %s877_s22 = sshll.u32 %s1245_s21, 4  ;;  %v315_v12 = vld [vmem:[#allocation2 + $0x50] sm:$0xff]  ;;  %v330_v13 = vld [vmem:[#allocation2 + $0xc8] sm:$0xff]  ;;  %v423_v16 = vld [vmem:[%s1388_s2 + $0x78] sm:$0xff]  ;;  %s865_s14 = sshll.u32 %s1245_s21, 3 }
  0x29   : > { %883 = vmatprep.subr.mxu0 %v334_v5  ;;  %s1251_s8 = scalar_lea.vmem %s1386_s0, %s877_s22  ;;  %v314_v15 = vld [vmem:[#allocation2 + $0x48] sm:$0xff]  ;;  %v422_v17 = vld [vmem:[%s1388_s2 + $0x70] sm:$0xff]  ;;  %v329_v18 = vld [vmem:[#allocation2 + $0xc0] sm:$0xff]  ;;  %936 = vmatpush3.msra.mxu1 %v423_v16  ;;  %s302_s17 = scalar_lea.vmem %s1393_s7, %s865_s14 }
  0x2a   : > { %884 = vmatpush3.msra.mxu0 %v318_v6  ;;  %v1254_v14 = vld [vmem:[%s1251_s8 + $0x8] sm:$0xff]  ;;  %v313_v19 = vld [vmem:[#allocation2 + $0x40] sm:$0xff]  ;;  %937 = vmatprep.subr.mxu1 %v1133_v0  ;;  %v328_v21 = vld [vmem:[#allocation2 + $0xb8] sm:$0xff]  ;;  %s862_s19 = sshll.u32 %s285_s18, 4  ;;  %s740_s9 = scalar_lea.sflag [#allocation4], %s285_s18 }
  0x2b   : > { %885 = vmatprep.subr.mxu0 %v333_v7  ;;  %401 = vmatprep.mubr.f32.mxu0 %v1254_v14  ;;  %v421_v20 = vld [vmem:[%s1388_s2 + $0x68] sm:$0xff]  ;;  %v312_v22 = vld [vmem:[#allocation2 + $0x38] sm:$0xff]  ;;  %v420_v23 = vld [vmem:[%s1388_s2 + $0x60] sm:$0xff]  ;;  %s287_s22 = scalar_lea.vmem [#allocation5], %s862_s19  ;;  %s1135_s28 = smov [#allocation5]  }
  0x2c   : > { %886 = vmatpush3.msra.mxu0 %v317_v8  ;;  %938 = vmatpush3.msra.mxu1 %v422_v17  ;;  %v327_v24 = vld [vmem:[#allocation2 + $0xb0] sm:$0xff]  ;;  %v419_v26 = vld [vmem:[%s1388_s2 + $0x58] sm:$0xff]  ;;  %v326_v27 = vld [vmem:[#allocation2 + $0xa8] sm:$0xff]  ;;  %s758_s23 = sshll.u32 %s287_s22, 4  ;;  %s1068_s14 = sshll.u32 %s1135_s28, 4  ;;  %s759_s23 = int_to_ptr.vmem [resolvable:$true] %s758_s23  ;;  %s1069_s14 = int_to_ptr.vmem [resolvable:$false] %s1068_s14 }
  0x2d   : > { %887 = vmatprep.subr.mxu0 %v332_v9  ;;  %939 = vmatprep.subr.mxu1 %v1133_v0  ;;  %v311_v25 = vld [vmem:[#allocation2 + $0x30] sm:$0xff]  ;;  %v310_v28 = vld [vmem:[#allocation2 + $0x28] sm:$0xff]  ;;  %v325_v30 = vld [vmem:[#allocation2 + $0xa0] sm:$0xff]  ;;  %s1064_s13 = scalar_lea.vmem %s759_s23, 256  ;;  %s1070_s15 = scalar_lea.vmem %s1069_s14, 512 }
  0x2e   : > { %888 = vmatpush3.msra.mxu0 %v316_v10  ;;  %940 = vmatpush3.msra.mxu1 %v421_v20  ;;  %v418_v29 = vld [vmem:[%s1388_s2 + $0x50] sm:$0xff]  ;;  %v309_v31 = vld [vmem:[#allocation2 + $0x20] sm:$0xff]  ;;  %v417_v32 = vld [vmem:[%s1388_s2 + $0x48] sm:$0xff]  ;;  %p1065_p8 = scmp.ne.s32.totalorder %s759_s23, %s1064_s13  ;;  %p1071_p11 = scmp.lt.s32.totalorder %s759_s23, %s1069_s14 }
  0x2f   : > { %889 = vmatprep.subr.mxu0 %v331_v11  ;;  %941 = vmatprep.subr.mxu1 %v1133_v0  ;;  %v324_v33 = vld [vmem:[#allocation2 + $0x98] sm:$0xff]  ;;  %v416_v35 = vld [vmem:[%s1388_s2 + $0x40] sm:$0xff]  ;;  %v323_v36 = vld [vmem:[#allocation2 + $0x90] sm:$0xff]  ;;  %p1072_p12 = scmp.lt.s32.totalorder %s1070_s15, %s1064_s13 }
  0x30   : > { %890 = vmatpush3.msra.mxu0 %v315_v12  ;;  %942 = vmatpush3.msra.mxu1 %v420_v23  ;;  %v308_v34 = vld [vmem:[#allocation2 + $0x18] sm:$0xff]  ;;  %v307_v37 = vld [vmem:[#allocation2 + $0x10] sm:$0xff]  ;;  %v322_v39 = vld [vmem:[#allocation2 + $0x88] sm:$0xff]  ;;  %p1066_p9 = pnand %p1065_p8, %p1214_p5 }
  0x31   : > { %891 = vmatprep.subr.mxu0 %v330_v13  ;;  %943 = vmatprep.subr.mxu1 %v1133_v0  ;;  %v415_v38 = vld [vmem:[%s1388_s2 + $0x38] sm:$0xff]  ;;  %v306_v40 = vld [vmem:[#allocation2 + $0x8] sm:$0xff]  ;;  %v414_v41 = vld [vmem:[%s1388_s2 + $0x30] sm:$0xff]  ;;  %p1073_p13 = por %p1072_p12, %p1071_p11 }
  0x32   : > { %892 = vmatpush3.msra.mxu0 %v314_v15  ;;  %944 = vmatpush3.msra.mxu1 %v419_v26  ;;  %v321_v42 = vld [vmem:[#allocation2 + $0x80] sm:$0xff]  ;;  %v413_v44 = vld [vmem:[%s1388_s2 + $0x28] sm:$0xff]  ;;  %v411_v47 = vld [vmem:[%s1388_s2 + $0x18] sm:$0xff]  ;;  %p1067_p10 = pneg %p1066_p9 }
  0x33   : > { %893 = vmatprep.subr.mxu0 %v329_v18  ;;  %945 = vmatprep.subr.mxu1 %v1133_v0  ;;  %v305_v43 = vld [vmem:[#allocation2] sm:$0xff]  ;;  %v410_v48 = vld [vmem:[%s1388_s2 + $0x10] sm:$0xff]  ;;  %v409_v49 = vld [vmem:[%s1388_s2 + $0x8] sm:$0xff] }
  0x34   : > { %894 = vmatpush3.msra.mxu0 %v313_v19  ;;  %946 = vmatpush3.msra.mxu1 %v418_v29  ;;  %v1300_v45 = vld [vmem:[%s1251_s8] sm:$0xff]  ;;  %v660_v62 = vld [vmem:[%s1391_s5 + $0x8] sm:$0xff]  ;;  %s756_s8 = scalar_lea.hbm %s1392_s6, %s878_s20  ;;  %p1074_p0 = pnand %p1073_p13, %p1067_p10 }
  0x35   : > { %895 = vmatprep.subr.mxu0 %v328_v21  ;;  %947 = vmatprep.subr.mxu1 %v1133_v0  ;;  %v412_v46 = vld [vmem:[%s1388_s2 + $0x20] sm:$0xff] }
  0x36   : > { %896 = vmatpush3.msra.mxu0 %v312_v22  ;;  %948 = vmatpush3.msra.mxu1 %v417_v32  ;;  %v408_v50 = vld [vmem:[%s1388_s2] sm:$0xff] }
  0x37   : > { %897 = vmatprep.subr.mxu0 %v327_v24  ;;  %949 = vmatprep.subr.mxu1 %v1133_v0  ;;  %v494_v51 = vld [vmem:[%s1389_s3] sm:$0xf] }
  0x38   : > { %898 = vmatpush3.msra.mxu0 %v311_v25  ;;  %950 = vmatpush3.msra.mxu1 %v416_v35  ;;  %v573_v56 = vld [vmem:[%s1390_s4] sm:$0xff] }
  0x39   : > { %899 = vmatprep.subr.mxu0 %v326_v27  ;;  %951 = vmatprep.subr.mxu1 %v1133_v0  ;;  %v659_v63 = vld [vmem:[%s1391_s5] sm:$0xff] }
  0x3a   : > { %900 = vmatpush3.msra.mxu0 %v310_v28  ;;  %952 = vmatpush3.msra.mxu1 %v415_v38 }
  0x3b   : > { %901 = vmatprep.subr.mxu0 %v325_v30  ;;  %953 = vmatprep.subr.mxu1 %v1133_v0 }
  0x3c   : > { %902 = vmatpush3.msra.mxu0 %v309_v31  ;;  %954 = vmatpush3.msra.mxu1 %v414_v41 }
  0x3d   : > { %903 = vmatprep.subr.mxu0 %v324_v33  ;;  %955 = vmatprep.subr.mxu1 %v1133_v0 }
  0x3e   : > { %904 = vmatpush3.msra.mxu0 %v308_v34  ;;  %956 = vmatpush3.msra.mxu1 %v413_v44 }
  0x3f   : > { %905 = vmatprep.subr.mxu0 %v323_v36  ;;  %957 = vmatprep.subr.mxu1 %v1133_v0 }
  0x40   : > { %906 = vmatpush3.msra.mxu0 %v307_v37  ;;  %958 = vmatpush3.msra.mxu1 %v412_v46 }
  0x41   : > { %907 = vmatprep.subr.mxu0 %v322_v39  ;;  %959 = vmatprep.subr.mxu1 %v1133_v0 }
  0x42   : > { %908 = vmatpush3.msra.mxu0 %v306_v40  ;;  %960 = vmatpush3.msra.mxu1 %v411_v47 }
  0x43   : > { %909 = vmatprep.subr.mxu0 %v321_v42  ;;  %961 = vmatprep.subr.mxu1 %v1133_v0 }
  0x44   : > { %910 = vmatpush3.msra.mxu0 %v305_v43  ;;  %962 = vmatpush3.msra.mxu1 %v410_v48 }
  0x45   : > { %402 = vmatmul.mubr.f32.vlgmr.msra.gmra.mxu0 %v1300_v45  ;;  %970 = vmatprep.subr.mxu0 %v1133_v0 }
  0x46   : > { %963 = vmatprep.subr.mxu1 %v1133_v0  ;;  %972 = vmatprep.mubr.msk.f32.mxu0 %vm1134_vm0, %v1133_v0 }
  0x47   : > { %964 = vmatpush3.msra.mxu1 %v409_v49  ;;  %971 = vmatpush3.xpose.msk.msra.mxu0 %vm495_vm1, %v494_v51 }
  0x48   : > { %965 = vmatprep.subr.mxu1 %v1133_v0  ;;  %694 = vmatprep.subr.mxu0 %v660_v62 }
  0x49   : > { %966 = vmatpush3.msra.mxu1 %v408_v50 }
  0x4a   : > { %975 = vmatprep.subr.mxu1 %v1133_v0 }
 0x105   : > { %v911_v52 = vpop.f32.mrf.mxu0 }
 0x107   : > { %v912_v53 = vpop.f32.mrf.mxu0 }
 0x108   : > { %v913_v54 = vadd.f32 %v912_v53, %v911_v52 }
 0x10a   : > { %v407_v55 = vmax.f32 %v913_v54, 0.0 }
 0x10c   : > { %968 = vmatmul.mubr.f32.vlgmr.msra.gmra.mxu1 %v407_v55 }
 0x10d   : > { %977 = vmatprep.mubr.msk.f32.mxu1 %vm1134_vm0, %v1133_v0  ;;  %976 = vmatpush3.xpose.msk.msra.mxu1 %vm574_vm2, %v573_v56 }
 0x1cc   : > { %v490_v57 = vpop.f32.mrf.mxu1 }
 0x1cd   : > { %973 = vmatmul.mubr.msk.f32.vlgmr.msra.gmra.mxu0 %vm495_vm1, %v490_v57 }
 0x1ce   : > { %v969_v58 = vpop.f32.mrf.mxu1  ;;  %728 = vmatprep.mubr.f32.mxu0 %v1133_v0  ;;  %695 = vmatpush1.msra.mxu0 %v659_v63 }
 0x28d   : > { %v568_v59 = vpop.f32.mrf.mxu0 }
 0x28e   : > { %v572_v60 = vmax.f32 %v568_v59, 0.0 }
 0x28f   : > { %v974_v61 = vpop.f32.mrf.mxu0 }
 0x290   : > { %978 = vmatmul.mubr.msk.f32.vlgmr.msra.gmra.mxu1 %vm574_vm2, %v572_v60 }
 0x350   : > { %v647_v1 = vpop.f32.mrf.mxu1 }
 0x351   : > { %v870_v2 = vmul.f32 -1.442695, %v647_v1 }
 0x352   : > { %v979_v0 = vpop.f32.mrf.mxu1 }
 0x353   : > { %1034 = vpow2.f32 %v870_v2 }
 0x360   : > { %v1035_v3 = vpop.eup %1034 }
 0x361   : > { %v654_v4 = vadd.f32 1.0, %v1035_v3 }
 0x363   : > { %1036 = vrcp.f32 %v654_v4 }
 0x370   : > { %v1037_v5 = vpop.eup %1036 }
 0x371   : > { %657 = vst.msk [vmem:[%s302_s17] sm:$0xff] %vm495_vm1, %v1037_v5  ;;  %v658_v6 = vadd.f32 1.0, %v1037_v5 }
 0x373   : > { %871 = vmatmul.mubr.msk.f32.vlgmr.msra.gmra.mxu0 %vm495_vm1, %v658_v6 }
 0x433   : > { %v730_v7 = vpop.f32.mrf.mxu0 }
 0x434   : > { %v735_v8 = vmul.f32 %v730_v7, %v1300_v45 }
 0x435   : > { %v732_v9 = vpop.f32.mrf.mxu0 }
 0x436   : > { %737 = vst [vmem:[%s287_s22] sm:$0xff] %v735_v8  ;;  %v736_v10 = vmul.f32 %v732_v9, %v1254_v14 }
 0x438   : > { %738 = vst [vmem:[%s287_s22 + $0x8] sm:$0xff] %v736_v10 }
 0x439   : > { %1077 = shalt.err (!%p1074_p0)
}
 0x43a   : > { %s1078_s16 = scalar_lea.hbm %s756_s8, 256  ;;  %s1082_s19 = scalar_lea.hbm %s1392_s6, 512 }
 0x43b   : > { %p1079_p1 = scmp.ne.s32.totalorder %s756_s8, %s1078_s16  ;;  %p1083_p4 = scmp.lt.s32.totalorder %s756_s8, %s1392_s6 }
 0x43c   : > { %p1084_p7 = scmp.lt.s32.totalorder %s1082_s19, %s1078_s16 }
 0x43d   : > { %p1080_p2 = pnand %p1079_p1, %p1214_p5 }
 0x43e   : > { %p1085_p6 = por %p1084_p7, %p1083_p4 }
 0x43f   : > { %p1081_p3 = pneg %p1080_p2 }
 0x441   : > { %p1086_p8 = pnand %p1085_p6, %p1081_p3 }
 0x443   : > { %1089 = shalt.err (!%p1086_p8)
}
 0x444   : > { %984 = dma.vmem_to_hbm [thread:$0]  (%p1214_p5), %s759_s23, 256, %s756_s8, %s740_s9  }
 0x445 PF: > { %p996_p9 = scmp.ge.s32.totalorder %s1128_s27, 2  ;;  %s773_s21 = sand.u32 1, %s1116_s24  }
 0x446   : > { %p1397_p10 = scmp.ne.s32.totalorder %s1395_s12, 0  ;;  %s774_s29 = scalar_lea.sflag [#allocation4], %s773_s21 }
 0x448   : > { %p991_p11 = pnand %p996_p9, %p1397_p10 }
 0x44a   : > { %p992_p12 = pneg %p991_p11 }
 0x44c   : > { %1111 = dma.done.wait (%p992_p12), %s774_s29, 256  }
 0x44d   : > { %1113 = vsyncadd (%p992_p12), %s774_s29, 4294967040  ;;  %p19_p13 = scmp.ge.s32.totalorder %s1201_s30, 4   ;;  %s1398_s24 = smov %s1120_s25 }
 0x44e   : > { %s1399_s25 = smov %s1124_s26  ;;  %s1400_s26 = smov %s1212_s10 }
 0x44f   : > { %s1401_s27 = smov %s1201_s30  ;;  %21 = sbr.rel (!%p19_p13) target bundleno = 4 (0x4), region = 96 }
 0x454   :  { %786 = vsyncpa [#allocation3], 1 }
 0x455   :  { %788 = vsyncpa [#allocation3 + $0x1], 1 }
 0x456   :  { %789 = vsyncpa [#allocation4], 1 }
 0x457   :  { %791 = vsyncpa [#allocation4 + $0x1], 1 }

</bundles_post_ra>
